<compile_context>
chip_gen: v7x
topology: tpu7x:2x2x1
jax: 0.10.0
libtpu: 0.0.40
codegen_flags: <defaults>
</compile_context>

<pallas_src>
import jax
import jax.numpy as jnp
from jax import lax
from jax.experimental import pallas as pl
from jax.experimental.pallas import tpu as pltpu


def _fused_linear_permute_flip_kernel(x_ref, w_ref, b_ref, o_ref):
    # x_ref: (B, S, Din)   w_ref: (Dout, Din)   b_ref: (Dout, 1)
    # o_ref: (B, Dout, S)
    B, Dout, S = o_ref.shape

    w = w_ref[...]        # (Dout, Din) — loaded once, reused for every batch
    bias = b_ref[...]     # (Dout, 1)   — broadcasts along the S (lane) axis

    # out[b, o, s] = sum_d w[o, d] * x[B-1-b, s, d] + bias[o]
    # Statically unrolled over B; leading-axis indexing only (no lane-offset
    # slices, no masked extracts).  Each contraction lands directly in the
    # already-permuted (Dout, S) orientation.
    for b in range(B):
        xb = x_ref[B - 1 - b]                               # (S, Din)
        yb = lax.dot_general(
            w, xb,
            dimension_numbers=(((1,), (1,)), ((), ())),     # 'od,sd->os'
            preferred_element_type=jnp.float32,
        ) + bias                                            # (Dout, S)
        o_ref[b] = yb.astype(o_ref.dtype)


def model_forward(x, weight, bias):
    """x: (B, S, Din) f32; weight: (Dout, Din); bias: (Dout,).
    Returns flip(permute(linear(x), (0, 2, 1)), axis=0) of shape (B, Dout, S)."""
    B, S, Din = x.shape
    Dout = weight.shape[0]
    bias_col = bias.reshape(Dout, 1)    # column vector: broadcasts over the S axis

    vmem_spec = pl.BlockSpec(memory_space=pltpu.MemorySpace.VMEM)
    cost = pl.CostEstimate(
        flops=2 * B * S * Din * Dout,
        transcendentals=0,
        bytes_accessed=4 * (B * S * Din + Dout * Din + Dout + B * Dout * S),
    )

    return pl.pallas_call(
        _fused_linear_permute_flip_kernel,
        out_shape=jax.ShapeDtypeStruct((B, Dout, S), x.dtype),
        in_specs=[vmem_spec, vmem_spec, vmem_spec],
        out_specs=vmem_spec,
        cost_estimate=cost,
        # No grid: one invocation, every operand fully VMEM-resident,
        # each DMA'd exactly once.
    )(x, weight, bias_col)


if __name__ == "__main__":
    key = jax.random.PRNGKey(0)
    kx, kw, kb = jax.random.split(key, 3)

    B, S, D = 2, 3, 3
    x1 = jax.random.normal(kx, (B, S, D), dtype=jnp.float32)

    # Deterministic Linear(3, 3) parameters (PyTorch-style uniform init range).
    bound = 1.0 / (D ** 0.5)
    weight = jax.random.uniform(kw, (D, D), dtype=jnp.float32,
                                minval=-bound, maxval=bound)
    bias = jax.random.uniform(kb, (D,), dtype=jnp.float32,
                              minval=-bound, maxval=bound)

    out = model_forward(x1, weight, bias)
    out = jax.block_until_ready(out)

    # Pure-JAX reference: linear -> permute(0, 2, 1) -> flip(0).
    ref = jnp.einsum("bsd,od->bso", x1, weight) + bias
    ref = jnp.flip(jnp.transpose(ref, (0, 2, 1)), axis=0)
    assert out.shape == (B, D, S)
    assert jnp.allclose(out, ref, atol=1e-5, rtol=1e-5)

    print("KERNEL_OK")
</pallas_src>

<mosaic_0001>
module attributes {stable_mosaic.version = 11 : i64} {
  func.func @_fused_linear_permute_flip_kernel(%arg0: memref<2x3x3xf32, #tpu.memory_space<vmem>>, %arg1: memref<3x3xf32, #tpu.memory_space<vmem>>, %arg2: memref<3x1xf32, #tpu.memory_space<vmem>>, %arg3: memref<2x3x3xf32, #tpu.memory_space<vmem>>) attributes {dimension_semantics = [], scalar_prefetch = 0 : i64, scratch_operands = 0 : i64, tpu.core_type = #tpu.core_type<tc>} {
    %c0 = arith.constant 0 : index
    %c0_0 = arith.constant 0 : index
    %0 = vector.load %arg1[%c0, %c0_0] : memref<3x3xf32, #tpu.memory_space<vmem>>, vector<3x3xf32>
    %c0_1 = arith.constant 0 : index
    %c0_2 = arith.constant 0 : index
    %1 = vector.load %arg2[%c0_1, %c0_2] : memref<3x1xf32, #tpu.memory_space<vmem>>, vector<3x1xf32>
    %c1 = arith.constant 1 : index
    %c0_3 = arith.constant 0 : index
    %c0_4 = arith.constant 0 : index
    %2 = vector.load %arg0[%c1, %c0_3, %c0_4] : memref<2x3x3xf32, #tpu.memory_space<vmem>>, vector<1x3x3xf32>
    %3 = vector.shape_cast %2 : vector<1x3x3xf32> to vector<3x3xf32>
    %cst = arith.constant dense<0.000000e+00> : vector<3x3xf32>
    %4 = tpu.matmul %0, %3, %cst {dimension_numbers = #tpu.dot_dimension_numbers<[1], [1], [0], [0], [0, 0, 1, 0], [], []>} : vector<3x3xf32>, vector<3x3xf32>, vector<3x3xf32> -> vector<3x3xf32>
    %5 = vector.broadcast %1 : vector<3x1xf32> to vector<3x3xf32>
    %6 = arith.addf %4, %5 : vector<3x3xf32>
    %c0_5 = arith.constant 0 : index
    %c0_6 = arith.constant 0 : index
    %c0_7 = arith.constant 0 : index
    %7 = vector.load %arg3[%c0_5, %c0_6, %c0_7] : memref<2x3x3xf32, #tpu.memory_space<vmem>>, vector<1x3x3xf32>
    %8 = vector.shape_cast %7 : vector<1x3x3xf32> to vector<3x3xf32>
    %9 = vector.shape_cast %6 : vector<3x3xf32> to vector<1x3x3xf32>
    tpu.vector_store %arg3[%c0_5, %c0_6, %c0_7], %9 {strides = array<i32>} : memref<2x3x3xf32, #tpu.memory_space<vmem>>, vector<1x3x3xf32>,
    %c0_8 = arith.constant 0 : index
    %c0_9 = arith.constant 0 : index
    %c0_10 = arith.constant 0 : index
    %10 = vector.load %arg0[%c0_8, %c0_9, %c0_10] : memref<2x3x3xf32, #tpu.memory_space<vmem>>, vector<1x3x3xf32>
    %11 = vector.shape_cast %10 : vector<1x3x3xf32> to vector<3x3xf32>
    %cst_11 = arith.constant dense<0.000000e+00> : vector<3x3xf32>
    %12 = tpu.matmul %0, %11, %cst_11 {dimension_numbers = #tpu.dot_dimension_numbers<[1], [1], [0], [0], [0, 0, 1, 0], [], []>} : vector<3x3xf32>, vector<3x3xf32>, vector<3x3xf32> -> vector<3x3xf32>
    %13 = vector.broadcast %1 : vector<3x1xf32> to vector<3x3xf32>
    %14 = arith.addf %12, %13 : vector<3x3xf32>
    %c1_12 = arith.constant 1 : index
    %c0_13 = arith.constant 0 : index
    %c0_14 = arith.constant 0 : index
    %15 = vector.load %arg3[%c1_12, %c0_13, %c0_14] : memref<2x3x3xf32, #tpu.memory_space<vmem>>, vector<1x3x3xf32>
    %16 = vector.shape_cast %15 : vector<1x3x3xf32> to vector<3x3xf32>
    %17 = vector.shape_cast %14 : vector<3x3xf32> to vector<1x3x3xf32>
    tpu.vector_store %arg3[%c1_12, %c0_13, %c0_14], %17 {strides = array<i32>} : memref<2x3x3xf32, #tpu.memory_space<vmem>>, vector<1x3x3xf32>,
    return
  }
}

</mosaic_0001>

<bundles_post_ra>
// kernel: tpu_custom_call.1
= control target key start
LH: loop header
LB: loop body
LE: loop exit
PB: predicated region body
PF: predicated region fallthrough
CT: control target
= control target key end

     0   :  { %vm23_vm0 = vcmask 23552   ;;  %v206_v0 = vmov 0.0   ;;  %vm207_vm1 = vmmov 0   ;;  %v208_v5 = vmov 0   ;;  %s251_s0 = inlined_call_operand.vmem [shape: f32[2,3,3], index: 0, kind: input, shape index: {}]   ;;  %s252_s1 = inlined_call_operand.vmem [shape: f32[3,3], index: 1, kind: input, shape index: {}]   ;;  %s253_s2 = inlined_call_operand.vmem [shape: f32[3,1], index: 2, kind: input, shape index: {}]   ;;  %s254_s3 = inlined_call_operand.vmem [shape: f32[2,3,3], index: 3, kind: output, shape index: {}]  }
   0x1   :  { %192 = vmatprep.subr.mxu0 %v206_v0  ;;  %197 = vmatprep.subr.mxu1 %v206_v0  ;;  %v182_v1 = vld [vmem:[%s251_s0 + $0x4] sm:$0x7]  ;;  %v102_v2 = vld [vmem:[%s251_s0] sm:$0x7]  ;;  %vm100_vm2 = vcmask 18432  }
   0x2   :  { %193 = vmatpush3.xpose.msk.msra.mxu0 %vm23_vm0, %v182_v1  ;;  %198 = vmatpush3.xpose.msk.msra.mxu1 %vm23_vm0, %v102_v2  ;;  %v14_v3 = vld [vmem:[%s252_s1] sm:$0x7] }
   0x3   :  { %194 = vmatprep.mubr.msk.f32.mxu0 %vm207_vm1, %v206_v0  ;;  %199 = vmatprep.mubr.msk.f32.mxu1 %vm207_vm1, %v206_v0  ;;  %v15_v4 = vld [vmem:[%s253_s2] sm:$0x7] }
   0x4   :  { %205 = vset.pattern.permute.xlu0 %v208_v5 }
   0x5   :  { %195 = vmatmul.mubr.msk.f32.vlgmr.msra.gmra.mrb[0].mxu0 %vm23_vm0, %v14_v3  ;;  %200 = vmatmul.mubr.msk.f32.vlgmr.msra.gmra.mrb[0].mxu1 %vm23_vm0, %v14_v3 }
   0x6   :  { %20 = vperm.xlu0 %205, %v15_v4  }
  0x85   :  { %v21_v6 = vpop.permute.xlu0 %20 }
  0xd8   :  { %v96_v7 = vpop.f32.mrb[0].mxu0  ;;  %v172_v8 = vpop.f32.mrb[0].mxu1 }
  0xd9   :  { %v97_v9 = vadd.f32 %v96_v7, %v21_v6  ;;  %v173_v10 = vadd.f32 %v172_v8, %v21_v6  ;;  %v196_v11 = vpop.f32.mrb[1].mxu0  ;;  %v201_v12 = vpop.f32.mrb[1].mxu1 }
  0xdb   :  { %101 = vst.msk [vmem:[%s254_s3] sm:$0x7] %vm100_vm2, %v97_v9  ;;  %187 = vst.msk [vmem:[%s254_s3 + $0x4] sm:$0x7] %vm100_vm2, %v173_v10 }

</bundles_post_ra>
